<compile_context>
chip_gen: v6e
topology: v6e:2x2x1
jax: 0.10.0
libtpu: 0.0.40
codegen_flags: <defaults>
</compile_context>

<pallas_src>
import functools

import jax
import jax.numpy as jnp
import numpy as np
from jax import lax
from jax.experimental import pallas as pl
from jax.experimental.pallas import tpu as pltpu


def _round_up(x, m):
    return (x + m - 1) // m * m


def _tile_loss_body(coefs_ref, contrast_ref, out_ref, pos_raw_fn, *,
                    tile_a, chunk_c, num_chunks, inv_temp, c_real):
    """Per-row SupCon loss for one anchor tile with online-softmax contrast chunking."""
    row0 = pl.multiple_of(pl.program_id(0) * tile_a, tile_a)
    # Anchors are (by construction) the leading rows of the contrast matrix, which is
    # already resident in VMEM: slice it instead of streaming a duplicate anchor input.
    a = contrast_ref[pl.ds(row0, tile_a), :]                              # [TA, D] bf16
    a_f32 = a.astype(jnp.float32)
    # Analytic self-similarity (replaces the [TA, CK] identity / iota mask slabs).
    self_logit = inv_temp * jnp.sum(a_f32 * a_f32, axis=1, keepdims=True)  # [TA, 1]

    def chunk_step(k, carry):
        m_run, d_run, s_run = carry
        if isinstance(k, int):                       # python-unrolled (static) path
            off = k * chunk_c
        else:                                        # lax.fori_loop (dynamic) path
            off = pl.multiple_of(k * chunk_c, chunk_c)
        c_chunk = contrast_ref[pl.ds(off, chunk_c), :]                     # [CK, D] bf16
        # MXU: contract the feature (lane) dim of both operands directly (transposed-RHS
        # matmul, no in-VMEM transpose); bf16 inputs, f32 accumulation.  1/temperature is
        # applied to the f32 result so the bf16 operands stay un-rescaled.
        raw = lax.dot_general(a, c_chunk, (((1,), (1,)), ((), ())),
                              preferred_element_type=jnp.float32) * inv_temp
        # Column validity as a [1, CK] bias row: one slab-wide add, no boolean slabs.
        col = off + lax.broadcasted_iota(jnp.int32, (1, chunk_c), 1)
        raw_b = raw + jnp.where(col < c_real, 0.0, -1e30)
        # Online (flash-style) running max / denominator.
        m_new = jnp.maximum(m_run, jnp.max(raw_b, axis=1, keepdims=True))
        alpha = jnp.exp(m_run - m_new)
        d_new = d_run * alpha + jnp.sum(jnp.exp(raw_b - m_new), axis=1, keepdims=True)
        # The positive-pair logit sum is independent of the max shift -> accumulate on the
        # un-shifted logits.  Padded contrast rows have all-zero features, so raw == 0
        # there and they contribute exactly 0 even if a pad label sentinel collides with
        # a real label (npos itself is precomputed exactly in the wrapper).
        s_new = s_run + jnp.sum(pos_raw_fn(k, raw), axis=1, keepdims=True)
        return m_new, d_new, s_new

    init = (jnp.full((tile_a, 1), -1e30, dtype=jnp.float32),
            jnp.zeros((tile_a, 1), dtype=jnp.float32),
            jnp.zeros((tile_a, 1), dtype=jnp.float32))
    if num_chunks <= 4:
        carry = init
        for k in range(num_chunks):
            carry = chunk_step(k, carry)
    else:
        carry = lax.fori_loop(0, num_chunks, chunk_step, init)
    m_run, d_run, s_run = carry

    # Remove the self column analytically from the softmax denominator.
    denom = d_run - jnp.exp(self_logit - m_run)
    lse = m_run + jnp.log(denom)                     # logsumexp over valid, non-self cols
    coefs = coefs_ref[...]                            # [TA, 3] f32 (wrapper-precomputed)
    coef_s = coefs[:, 0:1]                            # loss_scale / npos_safe
    coef_self = coefs[:, 1:2]                         # coef_s * self_weight
    coef_d = coefs[:, 2:3]                            # loss_scale * npos / npos_safe
    # loss_row = loss_scale * [ sum_pos(logits)/npos - logsumexp(non-self) ]; npos,
    # the exact f32 divide and padded-row zeroing are folded into the coefficients.
    out_ref[...] = coef_s * s_run - coef_self * self_logit - coef_d * lse


def _supcon_labels_kernel(coefs_ref, a_lab_ref, c_lab_ref, contrast_ref, out_ref, *,
                          tile_a, chunk_c, num_chunks, inv_temp, c_real):
    a_lab = a_lab_ref[...]                            # [TA, 1] int32

    def pos_raw(k, raw):
        # Positive mask rebuilt per chunk from labels: [TA,1] == [CK] broadcast compare.
        return jnp.where(a_lab == c_lab_ref[k], raw, 0.0)

    _tile_loss_body(coefs_ref, contrast_ref, out_ref, pos_raw,
                    tile_a=tile_a, chunk_c=chunk_c, num_chunks=num_chunks,
                    inv_temp=inv_temp, c_real=c_real)


def _supcon_mask_kernel(coefs_ref, mask_ref, contrast_ref, out_ref, *,
                        tile_a, chunk_c, num_chunks, inv_temp, c_real):
    def pos_raw(k, raw):
        # Explicit user mask streamed as bf16, upcast in-kernel.
        return mask_ref[k].astype(jnp.float32) * raw

    _tile_loss_body(coefs_ref, contrast_ref, out_ref, pos_raw,
                    tile_a=tile_a, chunk_c=chunk_c, num_chunks=num_chunks,
                    inv_temp=inv_temp, c_real=c_real)


def supcon_loss(features, labels=None, mask=None, *, temperature=0.3,
                contrast_mode='all', base_temperature=1.0):
    """Pallas implementation of SupConLoss.forward (PyTorch semantics)."""
    features = jnp.asarray(features, jnp.float32)
    features = features[..., None]                    # torch.unsqueeze(features, -1)
    if features.ndim < 3:
        raise ValueError('`features` needs to be [bsz, n_views, ...], '
                         'at least 3 dimensions are required')
    if features.ndim > 3:
        features = features.reshape(features.shape[0], features.shape[1], -1)
    bsz, n_views, dim = features.shape

    if labels is not None and mask is not None:
        raise ValueError('Cannot define both `labels` and `mask`')
    if contrast_mode == 'one':
        anchor_count = 1
    elif contrast_mode == 'all':
        anchor_count = n_views
    else:
        raise ValueError('Unknown mode: {}'.format(contrast_mode))

    contrast_count = n_views
    # torch.cat(torch.unbind(features, 1), 0): view-major contrast rows; the anchor
    # matrix is always the leading anchor_count*bsz rows of it (deduped MXU operand).
    contrast_feature = jnp.transpose(features, (1, 0, 2)).reshape(n_views * bsz, dim)
    A = anchor_count * bsz
    C = n_views * bsz

    # ---- tiling / padding ------------------------------------------------------
    if A <= 128:
        tile_a = _round_up(A, 16)          # single tile; tiny problem
    elif A <= 1024:
        tile_a = 128                       # >=2 tiles so both v7x TCs get work
    else:
        tile_a = 256
    a_pad = _round_up(A, tile_a)
    num_tiles = a_pad // tile_a
    d_pad = _round_up(dim, 128)            # feature dim on lanes

    r_min = max(a_pad, C)
    if r_min <= 1024:
        chunk_c = _round_up(r_min, 128)    # one full-width chunk (lane-aligned)
        num_chunks = 1
    else:
        chunk_c = 512                      # flash-style chunking of the contrast axis
        num_chunks = _round_up(r_min, chunk_c) // chunk_c
    r_pad = num_chunks * chunk_c

    feat = jnp.pad(contrast_feature, ((0, r_pad - C), (0, d_pad - dim)))
    feat = feat.astype(jnp.bfloat16)       # bf16 MXU inputs, f32 accumulation

    inv_temp = 1.0 / float(temperature)
    loss_scale = -(float(temperature) / float(base_temperature))

    # ---- per-anchor coefficients (exact, f32, computed once in the wrapper) ----
    if mask is None:
        if labels is None:
            labels_vec = jnp.arange(bsz, dtype=jnp.int32)             # identity mask
        else:
            labels_vec = jnp.asarray(labels).reshape(-1)
            if labels_vec.shape[0] != bsz:
                raise ValueError('Num of labels does not match num of features')
            labels_vec = labels_vec.astype(jnp.int32)
        row_labels = jnp.tile(labels_vec, n_views)                     # [C] (view-major)
        same = (labels_vec[:, None] == labels_vec[None, :]).astype(jnp.float32)
        npos_sample = float(n_views) * jnp.sum(same, axis=1) - 1.0     # excl. self
        npos = jnp.tile(npos_sample, anchor_count)                      # [A]
        self_w = jnp.ones((A,), jnp.float32)
    else:
        base_mask = jnp.asarray(mask, jnp.float32)
        big_mask = jnp.tile(base_mask, (anchor_count, contrast_count))  # [A, C]
        diag = jnp.diagonal(big_mask)                                    # [A]
        npos = jnp.sum(big_mask, axis=1) - diag
        self_w = diag

    npos_safe = jnp.where(npos < 1e-6, 1.0, npos)
    coef_s = loss_scale / npos_safe
    coef_self = coef_s * self_w
    coef_d = loss_scale * (npos / npos_safe)
    pad_a = (0, a_pad - A)                 # padded anchor rows -> all-zero coefficients
    coefs = jnp.stack([jnp.pad(coef_s, pad_a), jnp.pad(coef_self, pad_a),
                       jnp.pad(coef_d, pad_a)], axis=1).astype(jnp.float32)  # [a_pad, 3]

    coefs_spec = pl.BlockSpec((tile_a, 3), lambda i: (i, 0))

    # ---- per-path inputs / kernels ----------------------------------------------
    if mask is None:
        a_lab = jnp.pad(row_labels[:A], (0, a_pad - A),
                        constant_values=-1).reshape(a_pad, 1)
        c_lab = jnp.pad(row_labels, (0, r_pad - C),
                        constant_values=-1).reshape(num_chunks, chunk_c)
        kernel = functools.partial(_supcon_labels_kernel, tile_a=tile_a, chunk_c=chunk_c,
                                   num_chunks=num_chunks, inv_temp=inv_temp, c_real=C)

        def make_in_specs(resident_kwargs):
            return [
                coefs_spec,
                pl.BlockSpec((tile_a, 1), lambda i: (i, 0)),            # anchor labels
                pl.BlockSpec((num_chunks, chunk_c), lambda i: (0, 0),   # contrast labels
                             **resident_kwargs),
                pl.BlockSpec((r_pad, d_pad), lambda i: (0, 0),          # resident contrast
                             **resident_kwargs),
            ]

        args = (coefs, a_lab, c_lab, feat)
        extra_in_bytes = a_pad * 4 + r_pad * 4
    else:
        # Explicit user mask fallback: stream the tiled mask as bf16, chunk-major so the
        # per-chunk slice is a cheap leading-axis index in-kernel.
        big = jnp.pad(big_mask, ((0, a_pad - A), (0, r_pad - C))).astype(jnp.bfloat16)
        big = big.reshape(a_pad, num_chunks, chunk_c).transpose(1, 0, 2)
        kernel = functools.partial(_supcon_mask_kernel, tile_a=tile_a, chunk_c=chunk_c,
                                   num_chunks=num_chunks, inv_temp=inv_temp, c_real=C)

        def make_in_specs(resident_kwargs):
            return [
                coefs_spec,
                pl.BlockSpec((num_chunks, tile_a, chunk_c), lambda i: (0, i, 0)),
                pl.BlockSpec((r_pad, d_pad), lambda i: (0, 0),          # resident contrast
                             **resident_kwargs),
            ]

        args = (coefs, big, feat)
        extra_in_bytes = int(big.size) * 2

    # ---- VMEM budget (generation aware) and cost estimate ------------------------
    try:
        vmem_cap = int(pltpu.get_tpu_info().vmem_capacity_bytes)
    except Exception:  # pragma: no cover - conservative default
        vmem_cap = 64 * 1024 * 1024
    vmem_limit = max(32 * 1024 * 1024, min(vmem_cap * 3 // 4, 96 * 1024 * 1024))

    cost = pl.CostEstimate(
        flops=int(2 * a_pad * r_pad * d_pad),
        transcendentals=int(a_pad * r_pad),
        bytes_accessed=int(feat.size * 2 + coefs.size * 4 + extra_in_bytes + a_pad * 4))

    def _call(resident_kwargs, vmem_bytes):
        return pl.pallas_call(
            kernel,
            out_shape=jax.ShapeDtypeStruct((a_pad, 1), jnp.float32),
            grid=(num_tiles,),
            in_specs=make_in_specs(resident_kwargs),
            out_specs=pl.BlockSpec((tile_a, 1), lambda i: (i, 0)),
            compiler_params=pltpu.CompilerParams(
                dimension_semantics=("parallel",),     # row tiles independent (megacore)
                vmem_limit_bytes=int(vmem_bytes)),
            cost_estimate=cost,
        )(*args)

    try:
        # Single-buffer the constant (index-invariant) resident blocks.
        per_row_loss = _call(dict(pipeline_mode=pl.Buffered(1)), vmem_limit)
    except Exception:
        # Fallback (e.g. BlockSpec.pipeline_mode unsupported): default buffering and a
        # conservative VMEM budget.
        per_row_loss = _call({}, 32 * 1024 * 1024)

    # loss.view(anchor_count, batch_size).mean() == mean over the A real anchor rows
    # (padded rows produce exactly 0 because their coefficients are 0).
    return jnp.sum(per_row_loss) / float(A)


def _supcon_loss_ref(features, labels=None, mask=None, *, temperature=0.3,
                     contrast_mode='all', base_temperature=1.0):
    """Pure-JAX f32 reference mirroring the PyTorch forward."""
    features = jnp.asarray(features, jnp.float32)
    features = features[..., None]
    if features.ndim > 3:
        features = features.reshape(features.shape[0], features.shape[1], -1)
    bsz, n_views, dim = features.shape
    if labels is None and mask is None:
        base = jnp.eye(bsz, dtype=jnp.float32)
    elif labels is not None:
        labels = jnp.asarray(labels).reshape(-1, 1)
        base = (labels == labels.T).astype(jnp.float32)
    else:
        base = jnp.asarray(mask, jnp.float32)
    cf = jnp.transpose(features, (1, 0, 2)).reshape(n_views * bsz, dim)
    if contrast_mode == 'one':
        af = features[:, 0]
        anchor_count = 1
    else:
        af = cf
        anchor_count = n_views
    logits = af @ cf.T / temperature
    logits = logits - jnp.max(logits, axis=1, keepdims=True)
    m = jnp.tile(base, (anchor_count, n_views))
    A = anchor_count * bsz
    lm = jnp.ones_like(m).at[jnp.arange(A), jnp.arange(A)].set(0.0)
    m = m * lm
    exp_l = jnp.exp(logits) * lm
    log_prob = logits - jnp.log(exp_l.sum(1, keepdims=True))
    mpp = m.sum(1)
    mpp = jnp.where(mpp < 1e-6, 1.0, mpp)
    mlpp = (m * log_prob).sum(1) / mpp
    return (-(temperature / base_temperature) * mlpp).mean()


if __name__ == "__main__":
    key = jax.random.PRNGKey(0)
    bsz, n_views, dim = 8, 2, 32
    feats = jax.random.normal(key, (bsz, n_views, dim), dtype=jnp.float32)
    feats = feats / jnp.linalg.norm(feats, axis=-1, keepdims=True)
    labels = jnp.array([0, 1, 0, 1, 2, 2, 0, 1], dtype=jnp.int32)

    # Labels path, contrast_mode='all' (optimized: no O(N^2) mask materialized).
    loss = jax.block_until_ready(
        supcon_loss(feats, labels=labels, temperature=0.3, base_temperature=1.0))
    ref = _supcon_loss_ref(feats, labels=labels, temperature=0.3, base_temperature=1.0)
    np.testing.assert_allclose(np.asarray(loss), np.asarray(ref), rtol=2e-2, atol=2e-2)

    # Identity-mask path (labels=None, mask=None).
    loss_id = jax.block_until_ready(supcon_loss(feats, temperature=0.3))
    ref_id = _supcon_loss_ref(feats, temperature=0.3)
    np.testing.assert_allclose(np.asarray(loss_id), np.asarray(ref_id),
                               rtol=2e-2, atol=2e-2)

    # Explicit user-mask fallback path (streams a chunk-major bf16 mask).
    user_mask = (labels[:, None] == labels[None, :]).astype(jnp.float32)
    loss_m = jax.block_until_ready(supcon_loss(feats, mask=user_mask, temperature=0.3))
    np.testing.assert_allclose(np.asarray(loss_m), np.asarray(ref), rtol=2e-2, atol=2e-2)

    # contrast_mode='one'.
    loss_one = jax.block_until_ready(
        supcon_loss(feats, labels=labels, temperature=0.3, contrast_mode='one'))
    ref_one = _supcon_loss_ref(feats, labels=labels, temperature=0.3,
                               contrast_mode='one')
    np.testing.assert_allclose(np.asarray(loss_one), np.asarray(ref_one),
                               rtol=2e-2, atol=2e-2)

    print("KERNEL_OK")
</pallas_src>

<mosaic_0001>
module attributes {stable_mosaic.version = 11 : i64} {
  func.func @_supcon_labels_kernel(%arg0: i32, %arg1: memref<16x3xf32, #tpu.memory_space<vmem>>, %arg2: memref<16x1xi32, #tpu.memory_space<vmem>>, %arg3: memref<1x128xi32, #tpu.memory_space<vmem>>, %arg4: memref<128x128xbf16, #tpu.memory_space<vmem>>, %arg5: memref<16x1xf32, #tpu.memory_space<vmem>>) attributes {dimension_semantics = [#tpu.dimension_semantics<parallel>], iteration_bounds = array<i64: 1>, scalar_prefetch = 0 : i64, scratch_operands = 0 : i64, tpu.core_type = #tpu.core_type<tc>, window_params = [{transform_indices = @transform_0, window_bounds = array<i64: 16, 3>}, {transform_indices = @transform_1, window_bounds = array<i64: 16, 1>}, {pipeline_mode = #tpu.pipeline_mode<synchronous>, transform_indices = @transform_2, window_bounds = array<i64: 1, 128>}, {pipeline_mode = #tpu.pipeline_mode<synchronous>, transform_indices = @transform_3, window_bounds = array<i64: 128, 128>}, {transform_indices = @transform_4, window_bounds = array<i64: 16, 1>}]} {
    %c0 = arith.constant 0 : index
    %c0_0 = arith.constant 0 : index
    %0 = vector.load %arg2[%c0, %c0_0] : memref<16x1xi32, #tpu.memory_space<vmem>>, vector<16x1xi32>
    %c16_i32 = arith.constant 16 : i32
    %1 = arith.muli %arg0, %c16_i32 : i32
    %2 = tpu.assume_multiple %1, 16 : i32
    %3 = arith.index_cast %2 : i32 to index
    %c0_1 = arith.constant 0 : index
    %4 = vector.load %arg4[%3, %c0_1] : memref<128x128xbf16, #tpu.memory_space<vmem>>, vector<16x128xbf16>
    %5 = arith.extf %4 : vector<16x128xbf16> to vector<16x128xf32>
    %6 = arith.mulf %5, %5 : vector<16x128xf32>
    %cst = arith.constant dense<0.000000e+00> : vector<16xf32>
    %7 = vector.multi_reduction <add>, %6, %cst [1] : vector<16x128xf32> to vector<16xf32>
    %8 = vector.shape_cast %7 : vector<16xf32> to vector<16x1xf32>
    %cst_2 = arith.constant 3.33333325 : f32
    %9 = vector.broadcast %cst_2 : f32 to vector<16x1xf32>
    %10 = arith.mulf %9, %8 : vector<16x1xf32>
    %cst_3 = arith.constant -1.000000e+30 : f32
    %11 = vector.broadcast %cst_3 : f32 to vector<16x1xf32>
    %cst_4 = arith.constant 0.000000e+00 : f32
    %12 = vector.broadcast %cst_4 : f32 to vector<16x1xf32>
    %cst_5 = arith.constant 0.000000e+00 : f32
    %13 = vector.broadcast %cst_5 : f32 to vector<16x1xf32>
    %c0_6 = arith.constant 0 : index
    %c0_7 = arith.constant 0 : index
    %14 = vector.load %arg4[%c0_6, %c0_7] : memref<128x128xbf16, #tpu.memory_space<vmem>>, vector<128x128xbf16>
    %cst_8 = arith.constant dense<0.000000e+00> : vector<16x128xf32>
    %15 = tpu.matmul %4, %14, %cst_8 {dimension_numbers = #tpu.dot_dimension_numbers<[1], [1], [0], [0], [0, 0, 1, 0], [], []>} : vector<16x128xbf16>, vector<128x128xbf16>, vector<16x128xf32> -> vector<16x128xf32>
    %cst_9 = arith.constant 3.33333325 : f32
    %16 = vector.broadcast %cst_9 : f32 to vector<16x128xf32>
    %17 = arith.mulf %15, %16 : vector<16x128xf32>
    %18 = tpu.iota {dimensions = array<i32: 1>} : vector<1x128xi32>
    %c0_i32 = arith.constant 0 : i32
    %19 = vector.broadcast %c0_i32 : i32 to vector<1x128xi32>
    %20 = arith.addi %19, %18 : vector<1x128xi32>
    %c16_i32_10 = arith.constant 16 : i32
    %21 = vector.broadcast %c16_i32_10 : i32 to vector<1x128xi32>
    %22 = arith.cmpi slt, %20, %21 : vector<1x128xi32>
    %cst_11 = arith.constant 0.000000e+00 : f32
    %cst_12 = arith.constant -1.000000e+30 : f32
    %23 = vector.broadcast %cst_11 : f32 to vector<1x128xf32>
    %24 = vector.broadcast %cst_12 : f32 to vector<1x128xf32>
    %25 = arith.select %22, %23, %24 : vector<1x128xi1>, vector<1x128xf32>
    %26 = vector.broadcast %25 : vector<1x128xf32> to vector<16x128xf32>
    %27 = arith.addf %17, %26 : vector<16x128xf32>
    %cst_13 = arith.constant dense<0xFF800000> : vector<16xf32>
    %28 = vector.multi_reduction <maximumf>, %27, %cst_13 [1] : vector<16x128xf32> to vector<16xf32>
    %29 = vector.shape_cast %28 : vector<16xf32> to vector<16x1xf32>
    %30 = arith.maximumf %11, %29 : vector<16x1xf32>
    %31 = arith.subf %11, %30 : vector<16x1xf32>
    %32 = math.exp %31 : vector<16x1xf32>
    %33 = arith.mulf %12, %32 : vector<16x1xf32>
    %34 = vector.broadcast %30 : vector<16x1xf32> to vector<16x128xf32>
    %35 = arith.subf %27, %34 : vector<16x128xf32>
    %36 = math.exp %35 : vector<16x128xf32>
    %cst_14 = arith.constant dense<0.000000e+00> : vector<16xf32>
    %37 = vector.multi_reduction <add>, %36, %cst_14 [1] : vector<16x128xf32> to vector<16xf32>
    %38 = vector.shape_cast %37 : vector<16xf32> to vector<16x1xf32>
    %39 = arith.addf %33, %38 : vector<16x1xf32>
    %c0_15 = arith.constant 0 : index
    %c0_16 = arith.constant 0 : index
    %40 = vector.load %arg3[%c0_15, %c0_16] : memref<1x128xi32, #tpu.memory_space<vmem>>, vector<1x128xi32>
    %41 = vector.shape_cast %40 : vector<1x128xi32> to vector<128xi32>
    %42 = vector.shape_cast %41 : vector<128xi32> to vector<1x128xi32>
    %43 = vector.broadcast %0 : vector<16x1xi32> to vector<16x128xi32>
    %44 = vector.broadcast %42 : vector<1x128xi32> to vector<16x128xi32>
    %45 = arith.cmpi eq, %43, %44 : vector<16x128xi32>
    %cst_17 = arith.constant 0.000000e+00 : f32
    %46 = vector.broadcast %cst_17 : f32 to vector<16x128xf32>
    %47 = arith.select %45, %17, %46 : vector<16x128xi1>, vector<16x128xf32>
    %cst_18 = arith.constant dense<0.000000e+00> : vector<16xf32>
    %48 = vector.multi_reduction <add>, %47, %cst_18 [1] : vector<16x128xf32> to vector<16xf32>
    %49 = vector.shape_cast %48 : vector<16xf32> to vector<16x1xf32>
    %50 = arith.addf %13, %49 : vector<16x1xf32>
    %51 = arith.subf %10, %30 : vector<16x1xf32>
    %52 = math.exp %51 : vector<16x1xf32>
    %53 = arith.subf %39, %52 : vector<16x1xf32>
    %54 = math.log %53 : vector<16x1xf32>
    %55 = arith.addf %30, %54 : vector<16x1xf32>
    %c0_19 = arith.constant 0 : index
    %c0_20 = arith.constant 0 : index
    %56 = vector.load %arg1[%c0_19, %c0_20] : memref<16x3xf32, #tpu.memory_space<vmem>>, vector<16x3xf32>
    %57 = vector.extract_strided_slice %56 {offsets = [0, 0], sizes = [16, 1], strides = [1, 1]} : vector<16x3xf32> to vector<16x1xf32>
    %58 = vector.extract_strided_slice %56 {offsets = [0, 1], sizes = [16, 1], strides = [1, 1]} : vector<16x3xf32> to vector<16x1xf32>
    %59 = vector.extract_strided_slice %56 {offsets = [0, 2], sizes = [16, 1], strides = [1, 1]} : vector<16x3xf32> to vector<16x1xf32>
    %60 = arith.mulf %57, %50 : vector<16x1xf32>
    %61 = arith.mulf %58, %10 : vector<16x1xf32>
    %62 = arith.subf %60, %61 : vector<16x1xf32>
    %63 = arith.mulf %59, %55 : vector<16x1xf32>
    %64 = arith.subf %62, %63 : vector<16x1xf32>
    %c0_21 = arith.constant 0 : index
    %c0_22 = arith.constant 0 : index
    %65 = vector.load %arg5[%c0_21, %c0_22] : memref<16x1xf32, #tpu.memory_space<vmem>>, vector<16x1xf32>
    tpu.vector_store %arg5[%c0_21, %c0_22], %64 {strides = array<i32>} : memref<16x1xf32, #tpu.memory_space<vmem>>, vector<16x1xf32>,
    return
  }
  func.func @transform_0(%arg0: i32) -> (i32, i32) {
    %c0_i32 = arith.constant 0 : i32
    %c0_i32_0 = arith.constant 0 : i32
    return %arg0, %c0_i32 : i32, i32
  }
  func.func @transform_1(%arg0: i32) -> (i32, i32) {
    %c0_i32 = arith.constant 0 : i32
    %c0_i32_0 = arith.constant 0 : i32
    return %arg0, %c0_i32 : i32, i32
  }
  func.func @transform_2(%arg0: i32) -> (i32, i32) {
    %c0_i32 = arith.constant 0 : i32
    %c0_i32_0 = arith.constant 0 : i32
    %c0_i32_1 = arith.constant 0 : i32
    return %c0_i32, %c0_i32_0 : i32, i32
  }
  func.func @transform_3(%arg0: i32) -> (i32, i32) {
    %c0_i32 = arith.constant 0 : i32
    %c0_i32_0 = arith.constant 0 : i32
    %c0_i32_1 = arith.constant 0 : i32
    return %c0_i32, %c0_i32_0 : i32, i32
  }
  func.func @transform_4(%arg0: i32) -> (i32, i32) {
    %c0_i32 = arith.constant 0 : i32
    %c0_i32_0 = arith.constant 0 : i32
    return %arg0, %c0_i32 : i32, i32
  }
}

module attributes {stable_mosaic.version = 11 : i64} {
  func.func @_supcon_labels_kernel(%arg0: i32, %arg1: memref<16x3xf32, #tpu.memory_space<vmem>>, %arg2: memref<16x1xi32, #tpu.memory_space<vmem>>, %arg3: memref<1x128xi32, #tpu.memory_space<vmem>>, %arg4: memref<128x128xbf16, #tpu.memory_space<vmem>>, %arg5: memref<16x1xf32, #tpu.memory_space<vmem>>) attributes {dimension_semantics = [#tpu.dimension_semantics<parallel>], iteration_bounds = array<i64: 1>, scalar_prefetch = 0 : i64, scratch_operands = 0 : i64, tpu.core_type = #tpu.core_type<tc>, window_params = [{transform_indices = @transform_0, window_bounds = array<i64: 16, 3>}, {transform_indices = @transform_1, window_bounds = array<i64: 16, 1>}, {pipeline_mode = #tpu.pipeline_mode<synchronous>, transform_indices = @transform_2, window_bounds = array<i64: 1, 128>}, {pipeline_mode = #tpu.pipeline_mode<synchronous>, transform_indices = @transform_3, window_bounds = array<i64: 128, 128>}, {transform_indices = @transform_4, window_bounds = array<i64: 16, 1>}]} {
    %c0 = arith.constant 0 : index
    %c0_0 = arith.constant 0 : index
    %0 = vector.load %arg2[%c0, %c0_0] : memref<16x1xi32, #tpu.memory_space<vmem>>, vector<16x1xi32>
    %c16_i32 = arith.constant 16 : i32
    %1 = arith.muli %arg0, %c16_i32 : i32
    %2 = tpu.assume_multiple %1, 16 : i32
    %3 = arith.index_cast %2 : i32 to index
    %c0_1 = arith.constant 0 : index
    %4 = vector.load %arg4[%3, %c0_1] : memref<128x128xbf16, #tpu.memory_space<vmem>>, vector<16x128xbf16>
    %5 = arith.extf %4 : vector<16x128xbf16> to vector<16x128xf32>
    %6 = arith.mulf %5, %5 : vector<16x128xf32>
    %cst = arith.constant dense<0.000000e+00> : vector<16xf32>
    %7 = vector.multi_reduction <add>, %6, %cst [1] : vector<16x128xf32> to vector<16xf32>
    %8 = vector.shape_cast %7 : vector<16xf32> to vector<16x1xf32>
    %cst_2 = arith.constant 3.33333325 : f32
    %9 = vector.broadcast %cst_2 : f32 to vector<16x1xf32>
    %10 = arith.mulf %9, %8 : vector<16x1xf32>
    %cst_3 = arith.constant -1.000000e+30 : f32
    %11 = vector.broadcast %cst_3 : f32 to vector<16x1xf32>
    %cst_4 = arith.constant 0.000000e+00 : f32
    %12 = vector.broadcast %cst_4 : f32 to vector<16x1xf32>
    %cst_5 = arith.constant 0.000000e+00 : f32
    %13 = vector.broadcast %cst_5 : f32 to vector<16x1xf32>
    %c0_6 = arith.constant 0 : index
    %c0_7 = arith.constant 0 : index
    %14 = vector.load %arg4[%c0_6, %c0_7] : memref<128x128xbf16, #tpu.memory_space<vmem>>, vector<128x128xbf16>
    %cst_8 = arith.constant dense<0.000000e+00> : vector<16x128xf32>
    %15 = tpu.matmul %4, %14, %cst_8 {dimension_numbers = #tpu.dot_dimension_numbers<[1], [1], [0], [0], [0, 0, 1, 0], [], []>} : vector<16x128xbf16>, vector<128x128xbf16>, vector<16x128xf32> -> vector<16x128xf32>
    %cst_9 = arith.constant 3.33333325 : f32
    %16 = vector.broadcast %cst_9 : f32 to vector<16x128xf32>
    %17 = arith.mulf %15, %16 : vector<16x128xf32>
    %18 = tpu.iota {dimensions = array<i32: 1>} : vector<1x128xi32>
    %c0_i32 = arith.constant 0 : i32
    %19 = vector.broadcast %c0_i32 : i32 to vector<1x128xi32>
    %20 = arith.addi %19, %18 : vector<1x128xi32>
    %c16_i32_10 = arith.constant 16 : i32
    %21 = vector.broadcast %c16_i32_10 : i32 to vector<1x128xi32>
    %22 = arith.cmpi slt, %20, %21 : vector<1x128xi32>
    %cst_11 = arith.constant 0.000000e+00 : f32
    %cst_12 = arith.constant -1.000000e+30 : f32
    %23 = vector.broadcast %cst_11 : f32 to vector<1x128xf32>
    %24 = vector.broadcast %cst_12 : f32 to vector<1x128xf32>
    %25 = arith.select %22, %23, %24 : vector<1x128xi1>, vector<1x128xf32>
    %26 = vector.broadcast %25 : vector<1x128xf32> to vector<16x128xf32>
    %27 = arith.addf %17, %26 : vector<16x128xf32>
    %cst_13 = arith.constant dense<0xFF800000> : vector<16xf32>
    %28 = vector.multi_reduction <maximumf>, %27, %cst_13 [1] : vector<16x128xf32> to vector<16xf32>
    %29 = vector.shape_cast %28 : vector<16xf32> to vector<16x1xf32>
    %30 = arith.maximumf %11, %29 : vector<16x1xf32>
    %31 = arith.subf %11, %30 : vector<16x1xf32>
    %32 = math.exp %31 : vector<16x1xf32>
    %33 = arith.mulf %12, %32 : vector<16x1xf32>
    %34 = vector.broadcast %30 : vector<16x1xf32> to vector<16x128xf32>
    %35 = arith.subf %27, %34 : vector<16x128xf32>
    %36 = math.exp %35 : vector<16x128xf32>
    %cst_14 = arith.constant dense<0.000000e+00> : vector<16xf32>
    %37 = vector.multi_reduction <add>, %36, %cst_14 [1] : vector<16x128xf32> to vector<16xf32>
    %38 = vector.shape_cast %37 : vector<16xf32> to vector<16x1xf32>
    %39 = arith.addf %33, %38 : vector<16x1xf32>
    %c0_15 = arith.constant 0 : index
    %c0_16 = arith.constant 0 : index
    %40 = vector.load %arg3[%c0_15, %c0_16] : memref<1x128xi32, #tpu.memory_space<vmem>>, vector<1x128xi32>
    %41 = vector.shape_cast %40 : vector<1x128xi32> to vector<128xi32>
    %42 = vector.shape_cast %41 : vector<128xi32> to vector<1x128xi32>
    %43 = vector.broadcast %0 : vector<16x1xi32> to vector<16x128xi32>
    %44 = vector.broadcast %42 : vector<1x128xi32> to vector<16x128xi32>
    %45 = arith.cmpi eq, %43, %44 : vector<16x128xi32>
    %cst_17 = arith.constant 0.000000e+00 : f32
    %46 = vector.broadcast %cst_17 : f32 to vector<16x128xf32>
    %47 = arith.select %45, %17, %46 : vector<16x128xi1>, vector<16x128xf32>
    %cst_18 = arith.constant dense<0.000000e+00> : vector<16xf32>
    %48 = vector.multi_reduction <add>, %47, %cst_18 [1] : vector<16x128xf32> to vector<16xf32>
    %49 = vector.shape_cast %48 : vector<16xf32> to vector<16x1xf32>
    %50 = arith.addf %13, %49 : vector<16x1xf32>
    %51 = arith.subf %10, %30 : vector<16x1xf32>
    %52 = math.exp %51 : vector<16x1xf32>
    %53 = arith.subf %39, %52 : vector<16x1xf32>
    %54 = math.log %53 : vector<16x1xf32>
    %55 = arith.addf %30, %54 : vector<16x1xf32>
    %c0_19 = arith.constant 0 : index
    %c0_20 = arith.constant 0 : index
    %56 = vector.load %arg1[%c0_19, %c0_20] : memref<16x3xf32, #tpu.memory_space<vmem>>, vector<16x3xf32>
    %57 = vector.extract_strided_slice %56 {offsets = [0, 0], sizes = [16, 1], strides = [1, 1]} : vector<16x3xf32> to vector<16x1xf32>
    %58 = vector.extract_strided_slice %56 {offsets = [0, 1], sizes = [16, 1], strides = [1, 1]} : vector<16x3xf32> to vector<16x1xf32>
    %59 = vector.extract_strided_slice %56 {offsets = [0, 2], sizes = [16, 1], strides = [1, 1]} : vector<16x3xf32> to vector<16x1xf32>
    %60 = arith.mulf %57, %50 : vector<16x1xf32>
    %61 = arith.mulf %58, %10 : vector<16x1xf32>
    %62 = arith.subf %60, %61 : vector<16x1xf32>
    %63 = arith.mulf %59, %55 : vector<16x1xf32>
    %64 = arith.subf %62, %63 : vector<16x1xf32>
    %c0_21 = arith.constant 0 : index
    %c0_22 = arith.constant 0 : index
    %65 = vector.load %arg5[%c0_21, %c0_22] : memref<16x1xf32, #tpu.memory_space<vmem>>, vector<16x1xf32>
    tpu.vector_store %arg5[%c0_21, %c0_22], %64 {strides = array<i32>} : memref<16x1xf32, #tpu.memory_space<vmem>>, vector<16x1xf32>,
    return
  }
  func.func @transform_0(%arg0: i32) -> (i32, i32) {
    %c0_i32 = arith.constant 0 : i32
    %c0_i32_0 = arith.constant 0 : i32
    return %arg0, %c0_i32 : i32, i32
  }
  func.func @transform_1(%arg0: i32) -> (i32, i32) {
    %c0_i32 = arith.constant 0 : i32
    %c0_i32_0 = arith.constant 0 : i32
    return %arg0, %c0_i32 : i32, i32
  }
  func.func @transform_2(%arg0: i32) -> (i32, i32) {
    %c0_i32 = arith.constant 0 : i32
    %c0_i32_0 = arith.constant 0 : i32
    %c0_i32_1 = arith.constant 0 : i32
    return %c0_i32, %c0_i32_0 : i32, i32
  }
  func.func @transform_3(%arg0: i32) -> (i32, i32) {
    %c0_i32 = arith.constant 0 : i32
    %c0_i32_0 = arith.constant 0 : i32
    %c0_i32_1 = arith.constant 0 : i32
    return %c0_i32, %c0_i32_0 : i32, i32
  }
  func.func @transform_4(%arg0: i32) -> (i32, i32) {
    %c0_i32 = arith.constant 0 : i32
    %c0_i32_0 = arith.constant 0 : i32
    return %arg0, %c0_i32 : i32, i32
  }
}

</mosaic_0001>

<bundles_post_ra>
// kernel: tpu_custom_call.1
= control target key start
LH: loop header
LB: loop body
LE: loop exit
PB: predicated region body
PF: predicated region fallthrough
CT: control target
= control target key end

     0   :  { %9 = vsyncpa [#allocation3], 0  ;;  %s367_s15 = smov [#allocation2]   ;;  %s435_s0 = inlined_call_operand.vmem [shape: f32[16,3], index: 0, kind: input, shape index: {}]   ;;  %s436_s1 = inlined_call_operand.vmem [shape: s32[16,1], index: 1, kind: input, shape index: {}]   ;;  %s437_s2 = inlined_call_operand.vmem [shape: s32[1,128], index: 2, kind: input, shape index: {}]   ;;  %s438_s3 = inlined_call_operand.hbm [shape: bf16[128,128], index: 3, kind: input, shape index: {}]   ;;  %s439_s4 = inlined_call_operand.vmem [shape: f32[16,1], index: 4, kind: output, shape index: {}]  }
   0x1   :  { %s21_s16 = sshll.u32 %s367_s15, 4  ;;  %s22_s16 = int_to_ptr.vmem [resolvable:$true] %s21_s16 }
   0x2   :  { %s353_s17 = scalar_lea.vmem %s22_s16, 1024  ;;  %p358_p1 = scmp.lt.s32.totalorder %s22_s16, %s22_s16 }
   0x3   :  { %p354_p0 = scmp.ne.s32.totalorder %s22_s16, %s353_s17  ;;  %p359_p2 = scmp.lt.s32.totalorder %s353_s17, %s353_s17 }
   0x5   :  { %p360_p3 = por %p359_p2, %p358_p1 }
   0x7   :  { %p361_p4 = pnand %p360_p3, %p354_p0 }
   0x9   :  { %364 = shalt.err (!%p361_p4)
}
   0xa   :  { %s368_s18 = smov 64   ;;  %s369_s19 = smov 4  }
   0xb   :  { %27 = dma.hbm_to_vmem [thread:$0]  %s438_s3, 1024, %s22_s16, [#allocation3], %s368_s18, %s368_s18, %s369_s19  }
   0xc   :  { %365 = dma.done.wait [#allocation3], 1024  }
   0xd   :  { %366 = vsyncadd [#allocation3], 4294966272  ;;  %v370_v0 = vmov 0.0   ;;  %vm371_vm0 = vmmov 0   ;;  %v319_v1 = vld [vmem:[#allocation2 + $0x38] sm:$0xff]   ;;  %v320_v2 = vld [vmem:[#allocation2 + $0x30] sm:$0xff]   ;;  %v164_v14 = vlaneseq }
   0xe   :  { %288 = vmatprep.subr.bf16.mxu0 %v370_v0  ;;  %304 = vmatprep.mubr.msk.bf16.mxu0 %vm371_vm0, %v370_v0  ;;  %v321_v3 = vld [vmem:[#allocation2 + $0x28] sm:$0xff]   ;;  %v322_v4 = vld [vmem:[#allocation2 + $0x20] sm:$0xff]   ;;  %v323_v5 = vld [vmem:[#allocation2 + $0x18] sm:$0xff]   ;;  %v372_v17 = vmov -1e+30   ;;  %v373_v26 = vmov 0  }
   0xf   :  { %289 = vmatpush3.bf16.xpose.msra.mxu0 %v319_v1  ;;  %v324_v6 = vld [vmem:[#allocation2 + $0x10] sm:$0xff]   ;;  %v325_v7 = vld [vmem:[#allocation2 + $0x8] sm:$0xff]   ;;  %v326_v8 = vld [vmem:[#allocation2] sm:$0xff]   ;;  %v165_v15 = vand.u32 127, %v164_v14  ;;  %318 = vset.pattern.permute.xlu1 %v373_v26  ;;  %s374_s29 = smov 127   ;;  %s375_s30 = smov 126  }
  0x10   :  { %290 = vmatprep.subr.bf16.mxu0 %v370_v0  ;;  %v39_v9 = vld [vmem:[#allocation2] sm:$0xff]   ;;  %317 = vset.pattern.permute.xlu0 %v373_v26  ;;  %v33_v37 = vld [vmem:[%s436_s1 + $0x8] sm:$0xff]  ;;  %vm259_vm4 = vcmask 7168  }
  0x11   :  { %v41_v10 = vunpack.c.l.bf16 %v39_v9  ;;  %v42_v12 = vunpack.c.h.bf16 %v39_v9  ;;  %vm166_vm1 = vcmp.lt.s32.totalorder %v165_v15, 16  ;;  %v32_v38 = vld [vmem:[%s436_s1] sm:$0xff] }
  0x12   :  { %v167_v18 = vsel %vm166_vm1, 0.0, %v372_v17  ;;  %v278_v62 = vld [vmem:[%s437_s2] ss:$0 sm:$0xff] }
  0x13   :  { %v43_v11 = vmul.f32 %v41_v10, %v41_v10  ;;  %v44_v13 = vmul.f32 %v42_v12, %v42_v12  ;;  %v232_v10 = vld [vmem:[%s435_s0 + $0x8] sm:$0xff] }
  0x15   :  { %45 = vadd.xlane.f32.xlu1 %v43_v11 }
  0x17   :  { %291 = vmatpush3.bf16.xpose.msra.mxu0 %v320_v2 }
  0x18   :  { %292 = vmatprep.subr.bf16.mxu0 %v370_v0 }
  0x19   :  { %47 = vadd.xlane.f32.xlu1 %v44_v13 }
  0x1f   :  { %293 = vmatpush3.bf16.xpose.msra.mxu0 %v321_v3 }
  0x20   :  { %294 = vmatprep.subr.bf16.mxu0 %v370_v0 }
  0x27   :  { %295 = vmatpush3.bf16.xpose.msra.mxu0 %v322_v4 }
  0x28   :  { %296 = vmatprep.subr.bf16.mxu0 %v370_v0 }
  0x2f   :  { %297 = vmatpush3.bf16.xpose.msra.mxu0 %v323_v5 }
  0x30   :  { %298 = vmatprep.subr.bf16.mxu0 %v370_v0 }
  0x37   :  { %299 = vmatpush3.bf16.xpose.msra.mxu0 %v324_v6  ;;  %v231_v6 = vld [vmem:[%s435_s0] sm:$0xff] }
  0x38   :  { %300 = vmatprep.subr.bf16.mxu0 %v370_v0 }
  0x3f   :  { %301 = vmatpush3.bf16.xpose.msra.mxu0 %v325_v7 }
  0x40   :  { %302 = vmatprep.subr.bf16.mxu0 %v370_v0 }
  0x47   :  { %303 = vmatpush3.bf16.xpose.msra.mxu0 %v326_v8 }
  0x4e   :  { %305 = vmatmul.mubr.bf16.vlgmr.msra.gmra.mxu0 %v39_v9 }
  0x9e   :  { %v46_v39 = vpop.xlane.xlu1 %45 }
  0x9f   :  { %v49_v43 = vmul.f32 3.3333333, %v46_v39 }
  0xa1   :  { %v235_v8 = vmul.f32 %v231_v6, %v49_v43 }
  0xa2   :  { %v48_v41 = vpop.xlane.xlu1 %47 }
  0xa3   :  { %v50_v45 = vmul.f32 3.3333333, %v48_v41 }
  0xa5   :  { %v236_v12 = vmul.f32 %v232_v10, %v50_v45 }
 0x10e   :  { %v155_v16 = vpop.f32.mrf.mxu0 }
 0x10f   :  { %v404_v19 = vmul.f32 3.3333333, %v155_v16 }
 0x110   :  { %v306_v20 = vpop.f32.mrf.mxu0 }
 0x111   :  { %v168_v21 = vadd.f32 %v167_v18, %v404_v19 }
 0x112   :  { %v158_v22 = vpop.f32.mrf.mxu0 }
 0x113   :  { %v163_v23 = vmul.f32 3.3333333, %v158_v22  ;;  %170 = vmax.xlane.f32.xlu0 %v168_v21 }
 0x114   :  { %v307_v24 = vpop.f32.mrf.mxu0 }
 0x115   :  { %v169_v25 = vadd.f32 %v167_v18, %v163_v23 }
 0x117   :  { %172 = vmax.xlane.f32.xlu0 %v169_v25 }
 0x19c   :  { %v171_v27 = vpop.xlane.xlu0 %170 }
 0x19d   :  { %v407_v28 = vmax.f32 %v171_v27, -1e+30 }
 0x19f   :  { %v184_v29 = vsub.f32 %v168_v21, %v407_v28  ;;  %v176_v40 = vsub.f32 -1e+30, %v407_v28  ;;  %v217_v47 = vsub.f32 %v49_v43, %v407_v28 }
 0x1a0   :  { %v173_v30 = vpop.xlane.xlu0 %172 }
 0x1a1   :  { %v186_v31 = vmul.f32 1.442695, %v184_v29  ;;  %v175_v32 = vmax.f32 %v173_v30, -1e+30  ;;  %v178_v44 = vmul.f32 1.442695, %v176_v40 }
 0x1a2   :  { %v219_v49 = vmul.f32 1.442695, %v217_v47 }
 0x1a3   :  { %329 = vpow2.f32 %v186_v31  ;;  %v185_v33 = vsub.f32 %v169_v25, %v175_v32  ;;  %v177_v42 = vsub.f32 -1e+30, %v175_v32  ;;  %v218_v48 = vsub.f32 %v50_v45, %v175_v32 }
 0x1a5   :  { %v188_v34 = vmul.f32 1.442695, %v185_v33  ;;  %v180_v46 = vmul.f32 1.442695, %v177_v42  ;;  %v221_v50 = vmul.f32 1.442695, %v218_v48 }
 0x1a7   :  { %331 = vpow2.f32 %v188_v34 }
 0x1a8   :  { %333 = vpow2.f32 %v178_v44 }
 0x1a9   :  { %335 = vpow2.f32 %v180_v46 }
 0x1aa   :  { %337 = vpow2.f32 %v219_v49 }
 0x1ab   :  { %339 = vpow2.f32 %v221_v50 }
 0x1b0   :  { %v330_v35 = vpop.eup %329 }
 0x1b1   :  { %190 = vadd.xlane.f32.xlu0 %v330_v35 }
 0x1b4   :  { %v332_v36 = vpop.eup %331 }
 0x1b5   :  { %192 = vadd.xlane.f32.xlu1 %v332_v36  ;;  %v334_v51 = vpop.eup %333 }
 0x1b6   :  { %v336_v52 = vpop.eup %335  ;;  %v182_v53 = vmul.f32 0.0, %v334_v51 }
 0x1b7   :  { %v183_v56 = vmul.f32 0.0, %v336_v52  ;;  %v338_v58 = vpop.eup %337 }
 0x1b8   :  { %v340_v60 = vpop.eup %339 }
 0x1c6   :  { %201 = vperm.xlu1 %318, %v33_v37  }
 0x1c7   :  { %198 = vperm.xlu0 %317, %v32_v38  }
 0x23a   :  { %v191_v54 = vpop.xlane.xlu0 %190 }
 0x23b   :  { %v194_v55 = vadd.f32 %v191_v54, %v182_v53 }
 0x23d   :  { %v223_v61 = vsub.f32 %v194_v55, %v338_v58 }
 0x23e   :  { %v193_v57 = vpop.xlane.xlu1 %192 }
 0x23f   :  { %v195_v59 = vadd.f32 %v193_v57, %v183_v56 }
 0x241   :  { %v224_v63 = vsub.f32 %v195_v59, %v340_v60 }
 0x242   :  { %v202_v0 = vpop.permute.xlu1 %201  ;;  %v199_v1 = vpop.permute.xlu0 %198 }
 0x243   :  { %341 = vlog2.f32 %v224_v63  ;;  %vm208_vm2 = vcmp.eq.s32.totalorder %v202_v0, %v278_v62  ;;  %vm207_vm3 = vcmp.eq.s32.totalorder %v199_v1, %v278_v62 }
 0x244   :  { %343 = vlog2.f32 %v223_v61  ;;  %v210_v2 = vsel %vm208_vm2, %v163_v23, 0.0  ;;  %v209_v3 = vsel %vm207_vm3, %v404_v19, 0.0 }
 0x245   :  { %213 = vadd.xlane.f32.xlu0 %v210_v2  ;;  %211 = vadd.xlane.f32.xlu1 %v209_v3 }
 0x250   :  { %v342_v4 = vpop.eup %341 }
 0x251   :  { %v344_v5 = vpop.eup %343  ;;  %v228_v7 = vmul.f32 0.6931472, %v342_v4 }
 0x252   :  { %v226_v9 = vmul.f32 0.6931472, %v344_v5 }
 0x253   :  { %v230_v11 = vadd.f32 %v228_v7, %v175_v32 }
 0x254   :  { %v229_v13 = vadd.f32 %v226_v9, %v407_v28 }
 0x255   :  { %v248_v14 = vmul.f32 %v232_v10, %v230_v11 }
 0x256   :  { %239 = vrot.lane.b32.xlu1 %v235_v8, %s374_s29  ;;  %v247_v15 = vmul.f32 %v231_v6, %v229_v13 }
 0x25a   :  { %241 = vrot.lane.b32.xlu1 %v236_v12, %s374_s29 }
 0x25b   :  { %253 = vrot.lane.b32.xlu0 %v248_v14, %s375_s30 }
 0x25e   :  { %251 = vrot.lane.b32.xlu1 %v247_v15, %s375_s30 }
 0x2ce   :  { %v212_v16 = vpop.xlane.xlu1 %211  ;;  %v214_v17 = vpop.xlane.xlu0 %213 }
 0x2cf   :  { %v234_v19 = vmul.f32 %v232_v10, %v214_v17  ;;  %v233_v21 = vmul.f32 %v231_v6, %v212_v16 }
 0x2d2   :  { %v240_v18 = vpop.permute.xlu1 %239  ;;  %v254_v23 = vpop.permute.xlu0 %253 }
 0x2d3   :  { %v245_v24 = vsub.f32 %v233_v21, %v240_v18 }
 0x2d6   :  { %v242_v20 = vpop.permute.xlu1 %241 }
 0x2d7   :  { %v246_v22 = vsub.f32 %v234_v19, %v242_v20 }
 0x2d9   :  { %v258_v25 = vsub.f32 %v246_v22, %v254_v23 }
 0x2da   :  { %v252_v26 = vpop.permute.xlu1 %251 }
 0x2db   :  { %261 = vst.msk [vmem:[%s439_s4 + $0x8] sm:$0xff] %vm259_vm4, %v258_v25  ;;  %v257_v27 = vsub.f32 %v245_v24, %v252_v26 }
 0x2dd   :  { %260 = vst.msk [vmem:[%s439_s4] sm:$0xff] %vm259_vm4, %v257_v27 }
 0x2de   :  { %266 = vsyncpa [#allocation3], 1 }

// kernel: tpu_custom_call.1
= control target key start
LH: loop header
LB: loop body
LE: loop exit
PB: predicated region body
PF: predicated region fallthrough
CT: control target
= control target key end

     0   :  { %9 = vsyncpa [#allocation3], 0  ;;  %s367_s15 = smov [#allocation2]   ;;  %s435_s0 = inlined_call_operand.vmem [shape: f32[16,3], index: 0, kind: input, shape index: {}]   ;;  %s436_s1 = inlined_call_operand.vmem [shape: s32[16,1], index: 1, kind: input, shape index: {}]   ;;  %s437_s2 = inlined_call_operand.vmem [shape: s32[1,128], index: 2, kind: input, shape index: {}]   ;;  %s438_s3 = inlined_call_operand.hbm [shape: bf16[128,128], index: 3, kind: input, shape index: {}]   ;;  %s439_s4 = inlined_call_operand.vmem [shape: f32[16,1], index: 4, kind: output, shape index: {}]  }
   0x1   :  { %s21_s16 = sshll.u32 %s367_s15, 4  ;;  %s22_s16 = int_to_ptr.vmem [resolvable:$true] %s21_s16 }
   0x2   :  { %s353_s17 = scalar_lea.vmem %s22_s16, 1024  ;;  %p358_p1 = scmp.lt.s32.totalorder %s22_s16, %s22_s16 }
   0x3   :  { %p354_p0 = scmp.ne.s32.totalorder %s22_s16, %s353_s17  ;;  %p359_p2 = scmp.lt.s32.totalorder %s353_s17, %s353_s17 }
   0x5   :  { %p360_p3 = por %p359_p2, %p358_p1 }
   0x7   :  { %p361_p4 = pnand %p360_p3, %p354_p0 }
   0x9   :  { %364 = shalt.err (!%p361_p4)
}
   0xa   :  { %s368_s18 = smov 64   ;;  %s369_s19 = smov 4  }
   0xb   :  { %27 = dma.hbm_to_vmem [thread:$0]  %s438_s3, 1024, %s22_s16, [#allocation3], %s368_s18, %s368_s18, %s369_s19  }
   0xc   :  { %365 = dma.done.wait [#allocation3], 1024  }
   0xd   :  { %366 = vsyncadd [#allocation3], 4294966272  ;;  %v370_v0 = vmov 0.0   ;;  %vm371_vm0 = vmmov 0   ;;  %v319_v1 = vld [vmem:[#allocation2 + $0x38] sm:$0xff]   ;;  %v320_v2 = vld [vmem:[#allocation2 + $0x30] sm:$0xff]   ;;  %v164_v14 = vlaneseq }
   0xe   :  { %288 = vmatprep.subr.bf16.mxu0 %v370_v0  ;;  %304 = vmatprep.mubr.msk.bf16.mxu0 %vm371_vm0, %v370_v0  ;;  %v321_v3 = vld [vmem:[#allocation2 + $0x28] sm:$0xff]   ;;  %v322_v4 = vld [vmem:[#allocation2 + $0x20] sm:$0xff]   ;;  %v323_v5 = vld [vmem:[#allocation2 + $0x18] sm:$0xff]   ;;  %v372_v17 = vmov -1e+30   ;;  %v373_v26 = vmov 0  }
   0xf   :  { %289 = vmatpush3.bf16.xpose.msra.mxu0 %v319_v1  ;;  %v324_v6 = vld [vmem:[#allocation2 + $0x10] sm:$0xff]   ;;  %v325_v7 = vld [vmem:[#allocation2 + $0x8] sm:$0xff]   ;;  %v326_v8 = vld [vmem:[#allocation2] sm:$0xff]   ;;  %v165_v15 = vand.u32 127, %v164_v14  ;;  %318 = vset.pattern.permute.xlu1 %v373_v26  ;;  %s374_s29 = smov 127   ;;  %s375_s30 = smov 126  }
  0x10   :  { %290 = vmatprep.subr.bf16.mxu0 %v370_v0  ;;  %v39_v9 = vld [vmem:[#allocation2] sm:$0xff]   ;;  %317 = vset.pattern.permute.xlu0 %v373_v26  ;;  %v33_v37 = vld [vmem:[%s436_s1 + $0x8] sm:$0xff]  ;;  %vm259_vm4 = vcmask 7168  }
  0x11   :  { %v41_v10 = vunpack.c.l.bf16 %v39_v9  ;;  %v42_v12 = vunpack.c.h.bf16 %v39_v9  ;;  %vm166_vm1 = vcmp.lt.s32.totalorder %v165_v15, 16  ;;  %v32_v38 = vld [vmem:[%s436_s1] sm:$0xff] }
  0x12   :  { %v167_v18 = vsel %vm166_vm1, 0.0, %v372_v17  ;;  %v278_v62 = vld [vmem:[%s437_s2] ss:$0 sm:$0xff] }
  0x13   :  { %v43_v11 = vmul.f32 %v41_v10, %v41_v10  ;;  %v44_v13 = vmul.f32 %v42_v12, %v42_v12  ;;  %v232_v10 = vld [vmem:[%s435_s0 + $0x8] sm:$0xff] }
  0x15   :  { %45 = vadd.xlane.f32.xlu1 %v43_v11 }
  0x17   :  { %291 = vmatpush3.bf16.xpose.msra.mxu0 %v320_v2 }
  0x18   :  { %292 = vmatprep.subr.bf16.mxu0 %v370_v0 }
  0x19   :  { %47 = vadd.xlane.f32.xlu1 %v44_v13 }
  0x1f   :  { %293 = vmatpush3.bf16.xpose.msra.mxu0 %v321_v3 }
  0x20   :  { %294 = vmatprep.subr.bf16.mxu0 %v370_v0 }
  0x27   :  { %295 = vmatpush3.bf16.xpose.msra.mxu0 %v322_v4 }
  0x28   :  { %296 = vmatprep.subr.bf16.mxu0 %v370_v0 }
  0x2f   :  { %297 = vmatpush3.bf16.xpose.msra.mxu0 %v323_v5 }
  0x30   :  { %298 = vmatprep.subr.bf16.mxu0 %v370_v0 }
  0x37   :  { %299 = vmatpush3.bf16.xpose.msra.mxu0 %v324_v6  ;;  %v231_v6 = vld [vmem:[%s435_s0] sm:$0xff] }
  0x38   :  { %300 = vmatprep.subr.bf16.mxu0 %v370_v0 }
  0x3f   :  { %301 = vmatpush3.bf16.xpose.msra.mxu0 %v325_v7 }
  0x40   :  { %302 = vmatprep.subr.bf16.mxu0 %v370_v0 }
  0x47   :  { %303 = vmatpush3.bf16.xpose.msra.mxu0 %v326_v8 }
  0x4e   :  { %305 = vmatmul.mubr.bf16.vlgmr.msra.gmra.mxu0 %v39_v9 }
  0x9e   :  { %v46_v39 = vpop.xlane.xlu1 %45 }
  0x9f   :  { %v49_v43 = vmul.f32 3.3333333, %v46_v39 }
  0xa1   :  { %v235_v8 = vmul.f32 %v231_v6, %v49_v43 }
  0xa2   :  { %v48_v41 = vpop.xlane.xlu1 %47 }
  0xa3   :  { %v50_v45 = vmul.f32 3.3333333, %v48_v41 }
  0xa5   :  { %v236_v12 = vmul.f32 %v232_v10, %v50_v45 }
 0x10e   :  { %v155_v16 = vpop.f32.mrf.mxu0 }
 0x10f   :  { %v404_v19 = vmul.f32 3.3333333, %v155_v16 }
 0x110   :  { %v306_v20 = vpop.f32.mrf.mxu0 }
 0x111   :  { %v168_v21 = vadd.f32 %v167_v18, %v404_v19 }
 0x112   :  { %v158_v22 = vpop.f32.mrf.mxu0 }
 0x113   :  { %v163_v23 = vmul.f32 3.3333333, %v158_v22  ;;  %170 = vmax.xlane.f32.xlu0 %v168_v21 }
 0x114   :  { %v307_v24 = vpop.f32.mrf.mxu0 }
 0x115   :  { %v169_v25 = vadd.f32 %v167_v18, %v163_v23 }
 0x117   :  { %172 = vmax.xlane.f32.xlu0 %v169_v25 }
 0x19c   :  { %v171_v27 = vpop.xlane.xlu0 %170 }
 0x19d   :  { %v407_v28 = vmax.f32 %v171_v27, -1e+30 }
 0x19f   :  { %v184_v29 = vsub.f32 %v168_v21, %v407_v28  ;;  %v176_v40 = vsub.f32 -1e+30, %v407_v28  ;;  %v217_v47 = vsub.f32 %v49_v43, %v407_v28 }
 0x1a0   :  { %v173_v30 = vpop.xlane.xlu0 %172 }
 0x1a1   :  { %v186_v31 = vmul.f32 1.442695, %v184_v29  ;;  %v175_v32 = vmax.f32 %v173_v30, -1e+30  ;;  %v178_v44 = vmul.f32 1.442695, %v176_v40 }
 0x1a2   :  { %v219_v49 = vmul.f32 1.442695, %v217_v47 }
 0x1a3   :  { %329 = vpow2.f32 %v186_v31  ;;  %v185_v33 = vsub.f32 %v169_v25, %v175_v32  ;;  %v177_v42 = vsub.f32 -1e+30, %v175_v32  ;;  %v218_v48 = vsub.f32 %v50_v45, %v175_v32 }
 0x1a5   :  { %v188_v34 = vmul.f32 1.442695, %v185_v33  ;;  %v180_v46 = vmul.f32 1.442695, %v177_v42  ;;  %v221_v50 = vmul.f32 1.442695, %v218_v48 }
 0x1a7   :  { %331 = vpow2.f32 %v188_v34 }
 0x1a8   :  { %333 = vpow2.f32 %v178_v44 }
 0x1a9   :  { %335 = vpow2.f32 %v180_v46 }
 0x1aa   :  { %337 = vpow2.f32 %v219_v49 }
 0x1ab   :  { %339 = vpow2.f32 %v221_v50 }
 0x1b0   :  { %v330_v35 = vpop.eup %329 }
 0x1b1   :  { %190 = vadd.xlane.f32.xlu0 %v330_v35 }
 0x1b4   :  { %v332_v36 = vpop.eup %331 }
 0x1b5   :  { %192 = vadd.xlane.f32.xlu1 %v332_v36  ;;  %v334_v51 = vpop.eup %333 }
 0x1b6   :  { %v336_v52 = vpop.eup %335  ;;  %v182_v53 = vmul.f32 0.0, %v334_v51 }
 0x1b7   :  { %v183_v56 = vmul.f32 0.0, %v336_v52  ;;  %v338_v58 = vpop.eup %337 }
 0x1b8   :  { %v340_v60 = vpop.eup %339 }
 0x1c6   :  { %201 = vperm.xlu1 %318, %v33_v37  }
 0x1c7   :  { %198 = vperm.xlu0 %317, %v32_v38  }
 0x23a   :  { %v191_v54 = vpop.xlane.xlu0 %190 }
 0x23b   :  { %v194_v55 = vadd.f32 %v191_v54, %v182_v53 }
 0x23d   :  { %v223_v61 = vsub.f32 %v194_v55, %v338_v58 }
 0x23e   :  { %v193_v57 = vpop.xlane.xlu1 %192 }
 0x23f   :  { %v195_v59 = vadd.f32 %v193_v57, %v183_v56 }
 0x241   :  { %v224_v63 = vsub.f32 %v195_v59, %v340_v60 }
 0x242   :  { %v202_v0 = vpop.permute.xlu1 %201  ;;  %v199_v1 = vpop.permute.xlu0 %198 }
 0x243   :  { %341 = vlog2.f32 %v224_v63  ;;  %vm208_vm2 = vcmp.eq.s32.totalorder %v202_v0, %v278_v62  ;;  %vm207_vm3 = vcmp.eq.s32.totalorder %v199_v1, %v278_v62 }
 0x244   :  { %343 = vlog2.f32 %v223_v61  ;;  %v210_v2 = vsel %vm208_vm2, %v163_v23, 0.0  ;;  %v209_v3 = vsel %vm207_vm3, %v404_v19, 0.0 }
 0x245   :  { %213 = vadd.xlane.f32.xlu0 %v210_v2  ;;  %211 = vadd.xlane.f32.xlu1 %v209_v3 }
 0x250   :  { %v342_v4 = vpop.eup %341 }
 0x251   :  { %v344_v5 = vpop.eup %343  ;;  %v228_v7 = vmul.f32 0.6931472, %v342_v4 }
 0x252   :  { %v226_v9 = vmul.f32 0.6931472, %v344_v5 }
 0x253   :  { %v230_v11 = vadd.f32 %v228_v7, %v175_v32 }
 0x254   :  { %v229_v13 = vadd.f32 %v226_v9, %v407_v28 }
 0x255   :  { %v248_v14 = vmul.f32 %v232_v10, %v230_v11 }
 0x256   :  { %239 = vrot.lane.b32.xlu1 %v235_v8, %s374_s29  ;;  %v247_v15 = vmul.f32 %v231_v6, %v229_v13 }
 0x25a   :  { %241 = vrot.lane.b32.xlu1 %v236_v12, %s374_s29 }
 0x25b   :  { %253 = vrot.lane.b32.xlu0 %v248_v14, %s375_s30 }
 0x25e   :  { %251 = vrot.lane.b32.xlu1 %v247_v15, %s375_s30 }
 0x2ce   :  { %v212_v16 = vpop.xlane.xlu1 %211  ;;  %v214_v17 = vpop.xlane.xlu0 %213 }
 0x2cf   :  { %v234_v19 = vmul.f32 %v232_v10, %v214_v17  ;;  %v233_v21 = vmul.f32 %v231_v6, %v212_v16 }
 0x2d2   :  { %v240_v18 = vpop.permute.xlu1 %239  ;;  %v254_v23 = vpop.permute.xlu0 %253 }
 0x2d3   :  { %v245_v24 = vsub.f32 %v233_v21, %v240_v18 }
 0x2d6   :  { %v242_v20 = vpop.permute.xlu1 %241 }
 0x2d7   :  { %v246_v22 = vsub.f32 %v234_v19, %v242_v20 }
 0x2d9   :  { %v258_v25 = vsub.f32 %v246_v22, %v254_v23 }
 0x2da   :  { %v252_v26 = vpop.permute.xlu1 %251 }
 0x2db   :  { %261 = vst.msk [vmem:[%s439_s4 + $0x8] sm:$0xff] %vm259_vm4, %v258_v25  ;;  %v257_v27 = vsub.f32 %v245_v24, %v252_v26 }
 0x2dd   :  { %260 = vst.msk [vmem:[%s439_s4] sm:$0xff] %vm259_vm4, %v257_v27 }
 0x2de   :  { %266 = vsyncpa [#allocation3], 1 }

</bundles_post_ra>
